<compile_context>
chip_gen: v7x
topology: tpu7x:2x2x1
jax: 0.10.0
libtpu: 0.0.40
codegen_flags: <defaults>
</compile_context>

<pallas_src>
import functools
import math

import numpy as np
import jax
import jax.numpy as jnp
from jax.experimental import pallas as pl
from jax.experimental.pallas import tpu as pltpu


# ----------------------------------------------------------------------------
# Config (synthetic, deterministic — mirrors cfg[cfg_key].RPN_* fields)
# ----------------------------------------------------------------------------
CFG = {
    "TEST": dict(
        RPN_PRE_NMS_TOP_N=256,
        RPN_POST_NMS_TOP_N=32,
        RPN_NMS_THRESH=0.7,
        RPN_MIN_SIZE=16,  # NOTE: _filter_boxes is defined but never called in forward()
    )
}

# Guard against exp() overflow on pathological deltas (no-op for realistic inputs).
BBOX_XFORM_CLIP = math.log(1000.0 / 16.0)

LANE = 128


# ----------------------------------------------------------------------------
# Anchor generation (numpy, identical to the classic generate_anchors.py)
# ----------------------------------------------------------------------------
def _whctrs(anchor):
    w = anchor[2] - anchor[0] + 1
    h = anchor[3] - anchor[1] + 1
    x_ctr = anchor[0] + 0.5 * (w - 1)
    y_ctr = anchor[1] + 0.5 * (h - 1)
    return w, h, x_ctr, y_ctr


def _mkanchors(ws, hs, x_ctr, y_ctr):
    ws = ws[:, np.newaxis]
    hs = hs[:, np.newaxis]
    return np.hstack((x_ctr - 0.5 * (ws - 1), y_ctr - 0.5 * (hs - 1),
                      x_ctr + 0.5 * (ws - 1), y_ctr + 0.5 * (hs - 1)))


def _ratio_enum(anchor, ratios):
    w, h, x_ctr, y_ctr = _whctrs(anchor)
    size = w * h
    size_ratios = size / ratios
    ws = np.round(np.sqrt(size_ratios))
    hs = np.round(ws * ratios)
    return _mkanchors(ws, hs, x_ctr, y_ctr)


def _scale_enum(anchor, scales):
    w, h, x_ctr, y_ctr = _whctrs(anchor)
    ws = w * scales
    hs = h * scales
    return _mkanchors(ws, hs, x_ctr, y_ctr)


def generate_anchors(base_size=16, ratios=np.array([0.5, 1, 2]),
                     scales=np.array([8, 16, 32])):
    base_anchor = np.array([1, 1, base_size, base_size], dtype=np.float64) - 1
    ratio_anchors = _ratio_enum(base_anchor, ratios)
    anchors = np.vstack([_scale_enum(ratio_anchors[i, :], scales)
                         for i in range(ratio_anchors.shape[0])])
    return anchors.astype(np.float32)


# ----------------------------------------------------------------------------
# Pallas kernel 1: bbox_transform_inv + clip_boxes
#   im_info_ref : (B, 3)        SMEM scalar-prefetch (im_h, im_w, scale)
#   anchors_ref : (4, NS, 128)  VMEM, coordinate planes are dense tiles
#   deltas_ref  : (4, NS, 128)  VMEM
#   out_ref     : (4, NS, 128)  VMEM, decoded + clipped proposals for batch b
# ----------------------------------------------------------------------------
def decode_kernel(im_info_ref, anchors_ref, deltas_ref, out_ref):
    b = pl.program_id(0)

    ax1 = anchors_ref[0]          # (NS, 128) dense tiles
    ay1 = anchors_ref[1]
    ax2 = anchors_ref[2]
    ay2 = anchors_ref[3]
    widths = ax2 - ax1 + 1.0
    heights = ay2 - ay1 + 1.0
    ctr_x = ax1 + 0.5 * widths
    ctr_y = ay1 + 0.5 * heights

    dx = deltas_ref[0]
    dy = deltas_ref[1]
    dw = jnp.minimum(deltas_ref[2], BBOX_XFORM_CLIP)
    dh = jnp.minimum(deltas_ref[3], BBOX_XFORM_CLIP)

    pred_ctr_x = dx * widths + ctr_x
    pred_ctr_y = dy * heights + ctr_y
    pred_w = jnp.exp(dw) * widths
    pred_h = jnp.exp(dh) * heights

    im_h = im_info_ref[b, 0]
    im_w = im_info_ref[b, 1]

    # direct plane stores — no sublane concatenate / temporary buffer
    out_ref[0] = jnp.clip(pred_ctr_x - 0.5 * pred_w, 0.0, im_w - 1.0)
    out_ref[1] = jnp.clip(pred_ctr_y - 0.5 * pred_h, 0.0, im_h - 1.0)
    out_ref[2] = jnp.clip(pred_ctr_x + 0.5 * pred_w, 0.0, im_w - 1.0)
    out_ref[3] = jnp.clip(pred_ctr_y + 0.5 * pred_h, 0.0, im_h - 1.0)


def decode_pallas(im_info, anchors_r, deltas_r):
    B = deltas_r.shape[0]
    _, NS, L = anchors_r.shape
    grid_spec = pltpu.PrefetchScalarGridSpec(
        num_scalar_prefetch=1,
        grid=(B,),
        in_specs=[
            pl.BlockSpec((4, NS, L), lambda b, info: (0, 0, 0)),           # anchors, resident
            pl.BlockSpec((None, 4, NS, L), lambda b, info: (b, 0, 0, 0)),  # deltas per batch
        ],
        out_specs=pl.BlockSpec((None, 4, NS, L), lambda b, info: (b, 0, 0, 0)),
    )
    return pl.pallas_call(
        decode_kernel,
        out_shape=jax.ShapeDtypeStruct((B, 4, NS, L), jnp.float32),
        grid_spec=grid_spec,
        compiler_params=pltpu.CompilerParams(dimension_semantics=("parallel",)),
    )(im_info, anchors_r, deltas_r)


# ----------------------------------------------------------------------------
# Pallas kernel 2 (FUSED): pairwise suppression mask + greedy NMS scan.
#   boxes_T_ref : (4, n)  -> row operands (1, n), j along lanes
#   boxes_ref   : (n, 4)  -> col operands (n, 1), i along sublanes
#   keep_ref    : (1, n)  f32 keep flags (1.0 = keep), lane-dense output
#   mask_ref    : (n, n)  f32 VMEM scratch — (IoU > thresh), never leaves VMEM
#
# The divide is eliminated (inter > thresh * union).  The greedy suppression
# scan (sequential, boxes are pre-sorted by score) runs in-kernel over
# vreg-resident (1, n) rows, removing the previous XLA while-loop and the
# HBM round-trip of the (B, n, n) mask.
#
# TODO(synk): the column operand is still fed as a lane-sparse (n,4) block;
#             deriving it in-kernel needs a (4,n)->(n,4) relayout whose Mosaic
#             lowering is shape-constrained, so that transpose stays in XLA.
# TODO(synk): for realistic pre_nms_topN (2000-6000), tile the mask over
#             (i_block, j_block) so pre^2 f32 fits v7x's 64 MiB VMEM.
# ----------------------------------------------------------------------------
def nms_fused_kernel(boxes_T_ref, boxes_ref, keep_ref, mask_ref, *, thresh, n):
    bt = boxes_T_ref[...]   # (4, n)
    bc = boxes_ref[...]     # (n, 4)

    x1r, y1r, x2r, y2r = bt[0:1, :], bt[1:2, :], bt[2:3, :], bt[3:4, :]   # (1, n)
    x1c, y1c, x2c, y2c = bc[:, 0:1], bc[:, 1:2], bc[:, 2:3], bc[:, 3:4]   # (n, 1)

    area_r = (x2r - x1r + 1.0) * (y2r - y1r + 1.0)   # (1, n)
    area_c = (x2c - x1c + 1.0) * (y2c - y1c + 1.0)   # (n, 1)

    xx1 = jnp.maximum(x1c, x1r)
    yy1 = jnp.maximum(y1c, y1r)
    xx2 = jnp.minimum(x2c, x2r)
    yy2 = jnp.minimum(y2c, y2r)
    w = jnp.maximum(xx2 - xx1 + 1.0, 0.0)
    h = jnp.maximum(yy2 - yy1 + 1.0, 0.0)
    inter = w * h
    union = area_c + area_r - inter
    mask_ref[...] = (inter > thresh * union).astype(jnp.float32)          # (n, n)

    lane_idx = jax.lax.broadcasted_iota(jnp.int32, (1, n), 1)             # (1, n)

    def body(i, suppressed):
        # suppressed: (1, n) f32 0/1, carried in vregs (2 vregs for n=256)
        mask_row = mask_ref[pl.ds(i, 1), :]                               # (1, n)
        eq_i = (lane_idx == i).astype(jnp.float32)
        gt_i = (lane_idx > i).astype(jnp.float32)
        # scalar "is box i already suppressed?" via masked cross-lane reduce (XLU)
        supp_i = jnp.sum(suppressed * eq_i, axis=1, keepdims=True)        # (1, 1)
        newly = (1.0 - supp_i) * gt_i * mask_row
        return jnp.maximum(suppressed, newly)

    suppressed = jax.lax.fori_loop(0, n, body, jnp.zeros((1, n), jnp.float32))
    keep_ref[...] = 1.0 - suppressed


def nms_fused_pallas(boxes_sorted_T, boxes_sorted, thresh):
    B, _, n = boxes_sorted_T.shape
    kernel = functools.partial(nms_fused_kernel, thresh=float(thresh), n=n)
    grid_spec = pltpu.PrefetchScalarGridSpec(
        num_scalar_prefetch=0,
        grid=(B,),
        in_specs=[
            pl.BlockSpec((None, 4, n), lambda b: (b, 0, 0)),
            pl.BlockSpec((None, n, 4), lambda b: (b, 0, 0)),
        ],
        out_specs=pl.BlockSpec((None, 1, n), lambda b: (b, 0, 0)),
        scratch_shapes=[pltpu.VMEM((n, n), jnp.float32)],
    )
    keep = pl.pallas_call(
        kernel,
        out_shape=jax.ShapeDtypeStruct((B, 1, n), jnp.float32),
        grid_spec=grid_spec,
        compiler_params=pltpu.CompilerParams(dimension_semantics=("parallel",)),
    )(boxes_sorted_T, boxes_sorted)
    return keep[:, 0, :] > 0.5                                            # (B, n) bool


# ----------------------------------------------------------------------------
# Full proposal-layer forward
# ----------------------------------------------------------------------------
class ProposalLayerPallas:
    def __init__(self, feat_stride, scales, ratios):
        self._feat_stride = feat_stride
        self._anchors = generate_anchors(scales=np.array(scales),
                                         ratios=np.array(ratios))  # (A, 4) f32
        self._num_anchors = self._anchors.shape[0]

    def __call__(self, rpn_cls_prob, rpn_bbox_pred, im_info, cfg_key):
        cfg = CFG[cfg_key]
        pre_nms_topN = cfg["RPN_PRE_NMS_TOP_N"]
        post_nms_topN = cfg["RPN_POST_NMS_TOP_N"]
        nms_thresh = cfg["RPN_NMS_THRESH"]
        # TODO(synk): RPN_MIN_SIZE / _filter_boxes is defined but unused in the
        # reference forward(), so it is intentionally not applied here either.

        A = self._num_anchors
        B, _, H, W = rpn_cls_prob.shape
        K = H * W
        N = K * A

        # scores = input[0][:, A:, :, :]  -> NCHW -> NHWC -> (B, N)
        scores = rpn_cls_prob[:, A:, :, :]
        scores_flat = jnp.transpose(scores, (0, 2, 3, 1)).reshape(B, N).astype(jnp.float32)

        # anchors shifted over the feature grid: (N, 4) — static numpy
        shift_x = np.arange(0, W) * self._feat_stride
        shift_y = np.arange(0, H) * self._feat_stride
        sx, sy = np.meshgrid(shift_x, shift_y)
        shifts = np.vstack((sx.ravel(), sy.ravel(),
                            sx.ravel(), sy.ravel())).transpose().astype(np.float32)
        anchors_full = (self._anchors[np.newaxis, :, :] +
                        shifts[:, np.newaxis, :]).reshape(N, 4)

        # bbox deltas: NCHW -> NHWC -> (B, N, 4) -> coordinate-major (B, 4, N)
        deltas = jnp.transpose(rpn_bbox_pred, (0, 2, 3, 1)).reshape(B, N, 4)
        deltas_T = jnp.transpose(deltas, (0, 2, 1)).astype(jnp.float32)       # (B, 4, N)

        # pad N up to a multiple of 128 so every coordinate plane reshapes into
        # a dense (NS, 128) sublane x lane tile (padded scores = -inf so padded
        # boxes can never reach the pre-NMS top-k).
        Np = ((N + LANE - 1) // LANE) * LANE
        if Np != N:
            pad = Np - N
            anchors_full = np.concatenate(
                [anchors_full, np.zeros((pad, 4), np.float32)], axis=0)
            deltas_T = jnp.pad(deltas_T, ((0, 0), (0, 0), (0, pad)))
            scores_flat = jnp.pad(scores_flat, ((0, 0), (0, pad)),
                                  constant_values=-jnp.inf)
        NS = Np // LANE

        anchors_r = jnp.asarray(anchors_full.T.reshape(4, NS, LANE), dtype=jnp.float32)
        deltas_r = deltas_T.reshape(B, 4, NS, LANE)

        # --- Pallas kernel 1: decode + clip (dense coordinate planes) ---
        proposals_T = decode_pallas(im_info.astype(jnp.float32), anchors_r, deltas_r)
        proposals_T = proposals_T.reshape(B, 4, Np)                           # free reshape

        # sort by score (descending), take pre_nms_topN (plain JAX)
        pre = min(pre_nms_topN, N) if pre_nms_topN > 0 else N
        order = jnp.argsort(-scores_flat, axis=1)[:, :pre]                    # (B, pre)
        # TODO(synk): the post-sort gather stays in XLA; fusing it into the NMS
        # kernel needs a data-dependent lane gather (scalar-prefetch + DMA gather).
        props_sorted_T = jnp.take_along_axis(proposals_T, order[:, None, :], axis=2)  # (B,4,pre)
        props_sorted = jnp.transpose(props_sorted_T, (0, 2, 1))                       # (B,pre,4)

        # --- Pallas kernel 2: fused IoU mask + greedy NMS suppression scan ---
        keep = nms_fused_pallas(props_sorted_T, props_sorted, nms_thresh)     # (B, pre) bool

        # ragged keep-index compaction + output assembly (plain JAX)
        outputs = []
        for i in range(B):
            keep_idx = jnp.nonzero(keep[i], size=post_nms_topN, fill_value=pre)[0]
            valid = keep_idx < pre
            gathered = props_sorted[i][jnp.clip(keep_idx, 0, pre - 1)]
            gathered = jnp.where(valid[:, None], gathered, 0.0)
            col0 = jnp.full((post_nms_topN, 1), float(i), dtype=jnp.float32)
            outputs.append(jnp.concatenate([col0, gathered], axis=1))
        return jnp.stack(outputs, axis=0)                                     # (B, post, 5)


# ----------------------------------------------------------------------------
# Main
# ----------------------------------------------------------------------------
if __name__ == "__main__":
    feat_stride = 16
    scales = [8, 16, 32]
    ratios = [0.5, 1, 2]
    layer = ProposalLayerPallas(feat_stride, scales, ratios)
    A = layer._num_anchors  # 9

    B, H, W = 2, 16, 16
    key = jax.random.PRNGKey(0)
    k1, k2 = jax.random.split(key)

    rpn_cls_prob = jax.random.uniform(k1, (B, 2 * A, H, W), dtype=jnp.float32)
    rpn_bbox_pred = 0.1 * jax.random.normal(k2, (B, 4 * A, H, W), dtype=jnp.float32)
    im_info = jnp.array([[256.0, 256.0, 1.0],
                         [256.0, 256.0, 1.0]], dtype=jnp.float32)

    out = layer(rpn_cls_prob, rpn_bbox_pred, im_info, "TEST")
    out = jax.block_until_ready(out)
    assert out.shape == (B, CFG["TEST"]["RPN_POST_NMS_TOP_N"], 5)
    assert bool(jnp.all(jnp.isfinite(out)))
    print("KERNEL_OK")
</pallas_src>

<mosaic_0001>
module attributes {stable_mosaic.version = 11 : i64} {
  func.func @decode_kernel(%arg0: i32, %arg1: memref<2x3xf32, #tpu.memory_space<smem>>, %arg2: memref<4x18x128xf32, #tpu.memory_space<vmem>>, %arg3: memref<1x4x18x128xf32, #tpu.memory_space<vmem>>, %arg4: memref<1x4x18x128xf32, #tpu.memory_space<vmem>>) attributes {dimension_semantics = [#tpu.dimension_semantics<parallel>], iteration_bounds = array<i64: 2>, scalar_prefetch = 1 : i64, scratch_operands = 0 : i64, tpu.core_type = #tpu.core_type<tc>, window_params = [{pipeline_mode = #tpu.pipeline_mode<synchronous>, transform_indices = @transform_0, window_bounds = array<i64: 4, 18, 128>}, {transform_indices = @transform_1, window_bounds = array<i64: 1, 4, 18, 128>}, {transform_indices = @transform_2, window_bounds = array<i64: 1, 4, 18, 128>}]} {
    %c0 = arith.constant 0 : index
    %c0_0 = arith.constant 0 : index
    %c0_1 = arith.constant 0 : index
    %0 = vector.load %arg2[%c0, %c0_0, %c0_1] : memref<4x18x128xf32, #tpu.memory_space<vmem>>, vector<1x18x128xf32>
    %1 = vector.shape_cast %0 : vector<1x18x128xf32> to vector<18x128xf32>
    %c1 = arith.constant 1 : index
    %c0_2 = arith.constant 0 : index
    %c0_3 = arith.constant 0 : index
    %2 = vector.load %arg2[%c1, %c0_2, %c0_3] : memref<4x18x128xf32, #tpu.memory_space<vmem>>, vector<1x18x128xf32>
    %3 = vector.shape_cast %2 : vector<1x18x128xf32> to vector<18x128xf32>
    %c2 = arith.constant 2 : index
    %c0_4 = arith.constant 0 : index
    %c0_5 = arith.constant 0 : index
    %4 = vector.load %arg2[%c2, %c0_4, %c0_5] : memref<4x18x128xf32, #tpu.memory_space<vmem>>, vector<1x18x128xf32>
    %5 = vector.shape_cast %4 : vector<1x18x128xf32> to vector<18x128xf32>
    %c3 = arith.constant 3 : index
    %c0_6 = arith.constant 0 : index
    %c0_7 = arith.constant 0 : index
    %6 = vector.load %arg2[%c3, %c0_6, %c0_7] : memref<4x18x128xf32, #tpu.memory_space<vmem>>, vector<1x18x128xf32>
    %7 = vector.shape_cast %6 : vector<1x18x128xf32> to vector<18x128xf32>
    %8 = arith.subf %5, %1 : vector<18x128xf32>
    %cst = arith.constant 1.000000e+00 : f32
    %9 = vector.broadcast %cst : f32 to vector<18x128xf32>
    %10 = arith.addf %8, %9 : vector<18x128xf32>
    %11 = arith.subf %7, %3 : vector<18x128xf32>
    %cst_8 = arith.constant 1.000000e+00 : f32
    %12 = vector.broadcast %cst_8 : f32 to vector<18x128xf32>
    %13 = arith.addf %11, %12 : vector<18x128xf32>
    %cst_9 = arith.constant 5.000000e-01 : f32
    %14 = vector.broadcast %cst_9 : f32 to vector<18x128xf32>
    %15 = arith.mulf %14, %10 : vector<18x128xf32>
    %16 = arith.addf %1, %15 : vector<18x128xf32>
    %cst_10 = arith.constant 5.000000e-01 : f32
    %17 = vector.broadcast %cst_10 : f32 to vector<18x128xf32>
    %18 = arith.mulf %17, %13 : vector<18x128xf32>
    %19 = arith.addf %3, %18 : vector<18x128xf32>
    %c0_11 = arith.constant 0 : index
    %c0_12 = arith.constant 0 : index
    %c0_13 = arith.constant 0 : index
    %c0_14 = arith.constant 0 : index
    %20 = vector.load %arg3[%c0_11, %c0_12, %c0_13, %c0_14] : memref<1x4x18x128xf32, #tpu.memory_space<vmem>>, vector<1x1x18x128xf32>
    %21 = vector.shape_cast %20 : vector<1x1x18x128xf32> to vector<18x128xf32>
    %c0_15 = arith.constant 0 : index
    %c1_16 = arith.constant 1 : index
    %c0_17 = arith.constant 0 : index
    %c0_18 = arith.constant 0 : index
    %22 = vector.load %arg3[%c0_15, %c1_16, %c0_17, %c0_18] : memref<1x4x18x128xf32, #tpu.memory_space<vmem>>, vector<1x1x18x128xf32>
    %23 = vector.shape_cast %22 : vector<1x1x18x128xf32> to vector<18x128xf32>
    %c0_19 = arith.constant 0 : index
    %c2_20 = arith.constant 2 : index
    %c0_21 = arith.constant 0 : index
    %c0_22 = arith.constant 0 : index
    %24 = vector.load %arg3[%c0_19, %c2_20, %c0_21, %c0_22] : memref<1x4x18x128xf32, #tpu.memory_space<vmem>>, vector<1x1x18x128xf32>
    %25 = vector.shape_cast %24 : vector<1x1x18x128xf32> to vector<18x128xf32>
    %cst_23 = arith.constant 4.13516665 : f32
    %26 = vector.broadcast %cst_23 : f32 to vector<18x128xf32>
    %27 = arith.minimumf %25, %26 : vector<18x128xf32>
    %c0_24 = arith.constant 0 : index
    %c3_25 = arith.constant 3 : index
    %c0_26 = arith.constant 0 : index
    %c0_27 = arith.constant 0 : index
    %28 = vector.load %arg3[%c0_24, %c3_25, %c0_26, %c0_27] : memref<1x4x18x128xf32, #tpu.memory_space<vmem>>, vector<1x1x18x128xf32>
    %29 = vector.shape_cast %28 : vector<1x1x18x128xf32> to vector<18x128xf32>
    %cst_28 = arith.constant 4.13516665 : f32
    %30 = vector.broadcast %cst_28 : f32 to vector<18x128xf32>
    %31 = arith.minimumf %29, %30 : vector<18x128xf32>
    %32 = arith.mulf %21, %10 : vector<18x128xf32>
    %33 = arith.addf %32, %16 : vector<18x128xf32>
    %34 = arith.mulf %23, %13 : vector<18x128xf32>
    %35 = arith.addf %34, %19 : vector<18x128xf32>
    %36 = math.exp %27 : vector<18x128xf32>
    %37 = arith.mulf %36, %10 : vector<18x128xf32>
    %38 = math.exp %31 : vector<18x128xf32>
    %39 = arith.mulf %38, %13 : vector<18x128xf32>
    %40 = arith.index_cast %arg0 : i32 to index
    %c0_29 = arith.constant 0 : index
    %41 = memref.load %arg1[%40, %c0_29] : memref<2x3xf32, #tpu.memory_space<smem>>
    %42 = arith.index_cast %arg0 : i32 to index
    %c1_30 = arith.constant 1 : index
    %43 = memref.load %arg1[%42, %c1_30] : memref<2x3xf32, #tpu.memory_space<smem>>
    %cst_31 = arith.constant 5.000000e-01 : f32
    %44 = vector.broadcast %cst_31 : f32 to vector<18x128xf32>
    %45 = arith.mulf %44, %37 : vector<18x128xf32>
    %46 = arith.subf %33, %45 : vector<18x128xf32>
    %cst_32 = arith.constant 1.000000e+00 : f32
    %47 = arith.subf %43, %cst_32 : f32
    %cst_33 = arith.constant 0.000000e+00 : f32
    %48 = vector.broadcast %cst_33 : f32 to vector<18x128xf32>
    %49 = arith.maximumf %48, %46 : vector<18x128xf32>
    %50 = vector.broadcast %47 : f32 to vector<18x128xf32>
    %51 = arith.minimumf %50, %49 : vector<18x128xf32>
    %c0_34 = arith.constant 0 : index
    %c0_35 = arith.constant 0 : index
    %c0_36 = arith.constant 0 : index
    %c0_37 = arith.constant 0 : index
    %52 = vector.load %arg4[%c0_34, %c0_35, %c0_36, %c0_37] : memref<1x4x18x128xf32, #tpu.memory_space<vmem>>, vector<1x1x18x128xf32>
    %53 = vector.shape_cast %52 : vector<1x1x18x128xf32> to vector<18x128xf32>
    %54 = vector.shape_cast %51 : vector<18x128xf32> to vector<1x1x18x128xf32>
    tpu.vector_store %arg4[%c0_34, %c0_35, %c0_36, %c0_37], %54 {strides = array<i32>} : memref<1x4x18x128xf32, #tpu.memory_space<vmem>>, vector<1x1x18x128xf32>,
    %cst_38 = arith.constant 5.000000e-01 : f32
    %55 = vector.broadcast %cst_38 : f32 to vector<18x128xf32>
    %56 = arith.mulf %55, %39 : vector<18x128xf32>
    %57 = arith.subf %35, %56 : vector<18x128xf32>
    %cst_39 = arith.constant 1.000000e+00 : f32
    %58 = arith.subf %41, %cst_39 : f32
    %cst_40 = arith.constant 0.000000e+00 : f32
    %59 = vector.broadcast %cst_40 : f32 to vector<18x128xf32>
    %60 = arith.maximumf %59, %57 : vector<18x128xf32>
    %61 = vector.broadcast %58 : f32 to vector<18x128xf32>
    %62 = arith.minimumf %61, %60 : vector<18x128xf32>
    %c0_41 = arith.constant 0 : index
    %c1_42 = arith.constant 1 : index
    %c0_43 = arith.constant 0 : index
    %c0_44 = arith.constant 0 : index
    %63 = vector.load %arg4[%c0_41, %c1_42, %c0_43, %c0_44] : memref<1x4x18x128xf32, #tpu.memory_space<vmem>>, vector<1x1x18x128xf32>
    %64 = vector.shape_cast %63 : vector<1x1x18x128xf32> to vector<18x128xf32>
    %65 = vector.shape_cast %62 : vector<18x128xf32> to vector<1x1x18x128xf32>
    tpu.vector_store %arg4[%c0_41, %c1_42, %c0_43, %c0_44], %65 {strides = array<i32>} : memref<1x4x18x128xf32, #tpu.memory_space<vmem>>, vector<1x1x18x128xf32>,
    %cst_45 = arith.constant 5.000000e-01 : f32
    %66 = vector.broadcast %cst_45 : f32 to vector<18x128xf32>
    %67 = arith.mulf %66, %37 : vector<18x128xf32>
    %68 = arith.addf %33, %67 : vector<18x128xf32>
    %cst_46 = arith.constant 1.000000e+00 : f32
    %69 = arith.subf %43, %cst_46 : f32
    %cst_47 = arith.constant 0.000000e+00 : f32
    %70 = vector.broadcast %cst_47 : f32 to vector<18x128xf32>
    %71 = arith.maximumf %70, %68 : vector<18x128xf32>
    %72 = vector.broadcast %69 : f32 to vector<18x128xf32>
    %73 = arith.minimumf %72, %71 : vector<18x128xf32>
    %c0_48 = arith.constant 0 : index
    %c2_49 = arith.constant 2 : index
    %c0_50 = arith.constant 0 : index
    %c0_51 = arith.constant 0 : index
    %74 = vector.load %arg4[%c0_48, %c2_49, %c0_50, %c0_51] : memref<1x4x18x128xf32, #tpu.memory_space<vmem>>, vector<1x1x18x128xf32>
    %75 = vector.shape_cast %74 : vector<1x1x18x128xf32> to vector<18x128xf32>
    %76 = vector.shape_cast %73 : vector<18x128xf32> to vector<1x1x18x128xf32>
    tpu.vector_store %arg4[%c0_48, %c2_49, %c0_50, %c0_51], %76 {strides = array<i32>} : memref<1x4x18x128xf32, #tpu.memory_space<vmem>>, vector<1x1x18x128xf32>,
    %cst_52 = arith.constant 5.000000e-01 : f32
    %77 = vector.broadcast %cst_52 : f32 to vector<18x128xf32>
    %78 = arith.mulf %77, %39 : vector<18x128xf32>
    %79 = arith.addf %35, %78 : vector<18x128xf32>
    %cst_53 = arith.constant 1.000000e+00 : f32
    %80 = arith.subf %41, %cst_53 : f32
    %cst_54 = arith.constant 0.000000e+00 : f32
    %81 = vector.broadcast %cst_54 : f32 to vector<18x128xf32>
    %82 = arith.maximumf %81, %79 : vector<18x128xf32>
    %83 = vector.broadcast %80 : f32 to vector<18x128xf32>
    %84 = arith.minimumf %83, %82 : vector<18x128xf32>
    %c0_55 = arith.constant 0 : index
    %c3_56 = arith.constant 3 : index
    %c0_57 = arith.constant 0 : index
    %c0_58 = arith.constant 0 : index
    %85 = vector.load %arg4[%c0_55, %c3_56, %c0_57, %c0_58] : memref<1x4x18x128xf32, #tpu.memory_space<vmem>>, vector<1x1x18x128xf32>
    %86 = vector.shape_cast %85 : vector<1x1x18x128xf32> to vector<18x128xf32>
    %87 = vector.shape_cast %84 : vector<18x128xf32> to vector<1x1x18x128xf32>
    tpu.vector_store %arg4[%c0_55, %c3_56, %c0_57, %c0_58], %87 {strides = array<i32>} : memref<1x4x18x128xf32, #tpu.memory_space<vmem>>, vector<1x1x18x128xf32>,
    return
  }
  func.func @transform_0(%arg0: i32, %arg1: memref<2x3xf32, #tpu.memory_space<smem>>) -> (i32, i32, i32) {
    %c0_i32 = arith.constant 0 : i32
    %c0_i32_0 = arith.constant 0 : i32
    %c0_i32_1 = arith.constant 0 : i32
    %c0_i32_2 = arith.constant 0 : i32
    return %c0_i32, %c0_i32_0, %c0_i32_1 : i32, i32, i32
  }
  func.func @transform_1(%arg0: i32, %arg1: memref<2x3xf32, #tpu.memory_space<smem>>) -> (i32, i32, i32, i32) {
    %c0_i32 = arith.constant 0 : i32
    %c0_i32_0 = arith.constant 0 : i32
    %c0_i32_1 = arith.constant 0 : i32
    %c0_i32_2 = arith.constant 0 : i32
    return %arg0, %c0_i32, %c0_i32_0, %c0_i32_1 : i32, i32, i32, i32
  }
  func.func @transform_2(%arg0: i32, %arg1: memref<2x3xf32, #tpu.memory_space<smem>>) -> (i32, i32, i32, i32) {
    %c0_i32 = arith.constant 0 : i32
    %c0_i32_0 = arith.constant 0 : i32
    %c0_i32_1 = arith.constant 0 : i32
    %c0_i32_2 = arith.constant 0 : i32
    return %arg0, %c0_i32, %c0_i32_0, %c0_i32_1 : i32, i32, i32, i32
  }
}

</mosaic_0001>

<bundles_post_ra>
// kernel: tpu_custom_call.1
= control target key start
LH: loop header
LB: loop body
LE: loop exit
PB: predicated region body
PF: predicated region fallthrough
CT: control target
= control target key end

     0   :  { %s596_s0 = inlined_call_operand.vmem [shape: f32[2,3], index: 0, kind: input, shape index: {}]   ;;  %s597_s1 = inlined_call_operand.vmem [shape: f32[4,18,128], index: 1, kind: input, shape index: {}]   ;;  %s598_s2 = inlined_call_operand.vmem [shape: f32[2,4,18,128], index: 2, kind: input, shape index: {}]   ;;  %s599_s3 = inlined_call_operand.vmem [shape: f32[2,4,18,128], index: 3, kind: output, shape index: {}]  }
   0x1   :  { %s8_s14 = sshll.u32 %s596_s0, 4  ;;  %s9_s14 = int_to_ptr.vmem [resolvable:$true] %s8_s14 }
   0x2   :  { %s422_s15 = scalar_lea.vmem %s9_s14, 32  ;;  %p427_p1 = scmp.lt.s32.totalorder %s9_s14, %s9_s14 }
   0x3   :  { %p423_p0 = scmp.ne.s32.totalorder %s9_s14, %s422_s15  ;;  %p428_p2 = scmp.lt.s32.totalorder %s422_s15, %s422_s15 }
   0x5   :  { %p429_p3 = por %p428_p2, %p427_p1 }
   0x7   :  { %p430_p4 = pnand %p429_p3, %p423_p0 }
   0x9   :  { %433 = shalt.err (!%p430_p4)  }
   0xa   :  { %s444_s16 = smov [#allocation3]  }
   0xb   :  { %11 = dma.vmem_to_smem %s9_s14, 32, %s444_s16, [#allocation2] }
   0xc   :  { %438 = dma.done.wait [#allocation2], 32 }
   0xd   :  { %439 = vsyncadd [#allocation2], 4294967264 }
   0xe   :  { %13 = sfence }
   0xf   :  { %s468_s17 = smov 0  }
  0x10 LB: > { %s474_s0 = sadd.s32 4294967295, %s442_s17   ;;  %p365_p5 = scmp.ge.s32.totalorder %s442_s17, 1  ;;  %s442_s17 = sphi %s468_s17, %s19_s17  }
  0x11   : > { %p119_p6 = scmp.lt.s32.totalorder %s442_s17, 3 }
  0x13   : > { %p120_p7 = pnand %p365_p5, %p119_p6 }
  0x14   : > { %p141_p8 = scmp.lt.s32.totalorder (!%p120_p7), %s474_s0, 1  ;;  %v151_v0 = vld [vmem:[%s597_s1] sm:$0xff] (!%p120_p7)  ;;  %v371_v1 = vld [vmem:[%s597_s1 + $0x30] sm:$0xff] (!%p120_p7)  ;;  %v492_v2 = vld [vmem:[%s597_s1 + $0x8] sm:$0xff] (!%p120_p7)  ;;  %s386_s26 = sshll.u32 (!%p120_p7), %s474_s0, 7 }
  0x15   : > { %123 = sbr.rel (%p120_p7) target bundleno = 67 (0x43), region = 28  ;;  %v166_v3 = vsub.f32 (!%p120_p7), %v371_v1, %v151_v0  ;;  %v372_v4 = vld [vmem:[%s597_s1 + $0x38] sm:$0xff] (!%p120_p7)  ;;  %v501_v5 = vld [vmem:[%s597_s1 + $0x10] sm:$0x3] (!%p120_p7)  ;;  %v373_v6 = vld [vmem:[%s597_s1 + $0x40] sm:$0x3] (!%p120_p7) }
  0x16   : > { %v516_v7 = vld [vmem:[%s597_s1 + $0x18] sm:$0xff] (!%p120_p7)  ;;  %v374_v8 = vld [vmem:[%s597_s1 + $0x48] sm:$0xff] (!%p120_p7)  ;;  %v524_v9 = vld [vmem:[%s597_s1 + $0x20] sm:$0xff] (!%p120_p7)  ;;  %s243_s21 = sadd.s32 (!%p120_p7), 1, %s386_s26  ;;  %v167_v14 = vsub.f32 (!%p120_p7), %v372_v4, %v492_v2  ;;  %v168_v19 = vsub.f32 (!%p120_p7), %v373_v6, %v501_v5  ;;  %s554_s27 = sld [smem:[#allocation3 + %s386_s26]] (!%p120_p7) }
  0x17   : > { %v375_v11 = vld [vmem:[%s597_s1 + $0x50] sm:$0xff] (!%p120_p7)  ;;  %v533_v12 = vld [vmem:[%s597_s1 + $0x28] sm:$0x3] (!%p120_p7)  ;;  %v376_v16 = vld [vmem:[%s597_s1 + $0x58] sm:$0x3] (!%p120_p7)  ;;  %v169_v17 = vadd.f32 (!%p120_p7), 1.0, %v166_v3  ;;  %v172_v24 = vsub.f32 (!%p120_p7), %v374_v8, %v516_v7 }
  0x18   : > { %v173_v25 = vsub.f32 (!%p120_p7), %v375_v11, %v524_v9  ;;  %v174_v29 = vsub.f32 (!%p120_p7), %v376_v16, %v533_v12  ;;  %s549_s25 = sld [smem:[#allocation3 + %s243_s21]] (!%p120_p7)  ;;  %v170_v30 = vadd.f32 (!%p120_p7), 1.0, %v167_v14  ;;  %v171_v33 = vadd.f32 (!%p120_p7), 1.0, %v168_v19 }
  0x19   : > { %v178_v36 = vmul.f32 (!%p120_p7), 0.5, %v169_v17  ;;  %v175_v37 = vadd.f32 (!%p120_p7), 1.0, %v172_v24 }
  0x1a   : > { %v176_v38 = vadd.f32 (!%p120_p7), 1.0, %v173_v25  ;;  %v556_v40 = vadd.f32 (!%p120_p7), 1.0, %v174_v29  ;;  %v179_v43 = vmul.f32 (!%p120_p7), 0.5, %v170_v30  ;;  %v180_v45 = vmul.f32 (!%p120_p7), 0.5, %v171_v33 }
  0x1b   : > { %v184_v48 = vmul.f32 (!%p120_p7), 0.5, %v175_v37  ;;  %v181_v50 = vadd.f32 (!%p120_p7), %v178_v36, %v151_v0 }
  0x1c   : > { %s480_s18 = scalar_select %p141_p8, %s474_s0, 1  ;;  %v185_v49 = vmul.f32 0.5, %v176_v38  ;;  %v186_v54 = vmul.f32 0.5, %v556_v40  ;;  %v182_v55 = vadd.f32 %v179_v43, %v492_v2  ;;  %v183_v58 = vadd.f32 %v180_v45, %v501_v5 }
  0x1d   : > { %s388_s26 = sadd.f32 -1.0, %s554_s27  ;;  %v187_v61 = vadd.f32 %v516_v7, %v184_v48 }
  0x1e   : > { %s400_s23 = smul.u32 96, %s480_s18  ;;  %s387_s0 = sadd.f32 -1.0, %s549_s25  ;;  %v188_v63 = vadd.f32 %v524_v9, %v185_v49  ;;  %v189_v6 = vadd.f32 %v533_v12, %v186_v54 }
  0x1f   : > { %v272_v7 = vstv %s388_s26 }
  0x20   : > { %s511_s8 = scalar_lea.vmem %s598_s2, %s400_s23  ;;  %s578_s30 = scalar_lea.vmem %s599_s3, %s400_s23 }
  0x21   : > { %v380_v10 = vld [vmem:[%s511_s8 + $0x30] sm:$0xff]  ;;  %v381_v15 = vld [vmem:[%s511_s8 + $0x38] sm:$0xff]  ;;  %v382_v20 = vld [vmem:[%s511_s8 + $0x40] sm:$0x3] }
  0x22   : > { %v201_v13 = vmin.f32 %v380_v10, 4.1351666  ;;  %v202_v18 = vmin.f32 %v381_v15, 4.1351666  ;;  %v383_v21 = vld [vmem:[%s511_s8 + $0x48] sm:$0xff]  ;;  %v384_v28 = vld [vmem:[%s511_s8 + $0x50] sm:$0xff]  ;;  %v255_v10 = vstv %s387_s0 }
  0x23   : > { %v203_v23 = vmin.f32 %v382_v20, 4.1351666  ;;  %v208_v27 = vmin.f32 %v383_v21, 4.1351666  ;;  %v385_v32 = vld [vmem:[%s511_s8 + $0x58] sm:$0x3] }
  0x24   : > { %v223_v22 = vmul.f32 1.442695, %v201_v13  ;;  %v225_v26 = vmul.f32 1.442695, %v202_v18  ;;  %v209_v35 = vmin.f32 %v384_v28, 4.1351666 }
  0x25   : > { %v227_v31 = vmul.f32 1.442695, %v203_v23  ;;  %v232_v34 = vmul.f32 1.442695, %v208_v27  ;;  %v210_v41 = vmin.f32 %v385_v32, 4.1351666 }
  0x26   : > { %410 = vpow2.f32 %v223_v22  ;;  %v234_v39 = vmul.f32 1.442695, %v209_v35  ;;  %v190_v42 = vld [vmem:[%s511_s8] sm:$0xff]  ;;  %v191_v44 = vld [vmem:[%s511_s8 + $0x8] sm:$0xff]  ;;  %v192_v47 = vld [vmem:[%s511_s8 + $0x10] sm:$0x3] }
  0x27   : > { %412 = vpow2.f32 %v225_v26  ;;  %v236_v46 = vmul.f32 1.442695, %v210_v41  ;;  %v211_v51 = vmul.f32 %v190_v42, %v169_v17  ;;  %v377_v52 = vld [vmem:[%s511_s8 + $0x18] sm:$0xff]  ;;  %v378_v53 = vld [vmem:[%s511_s8 + $0x20] sm:$0xff]  ;;  %v212_v56 = vmul.f32 %v191_v44, %v170_v30  ;;  %v379_v57 = vld [vmem:[%s511_s8 + $0x28] sm:$0x3] }
  0x28   : > { %414 = vpow2.f32 %v227_v31  ;;  %v213_v59 = vmul.f32 %v192_v47, %v171_v33  ;;  %v217_v62 = vmul.f32 %v377_v52, %v175_v37  ;;  %v218_v0 = vmul.f32 %v378_v53, %v176_v38 }
  0x29   : > { %416 = vpow2.f32 %v232_v34  ;;  %v214_v3 = vadd.f32 %v211_v51, %v181_v50  ;;  %v219_v2 = vmul.f32 %v379_v57, %v556_v40  ;;  %v215_v11 = vadd.f32 %v212_v56, %v182_v55 }
  0x2a   : > { %418 = vpow2.f32 %v234_v39  ;;  %v216_v15 = vadd.f32 %v213_v59, %v183_v58  ;;  %v220_v19 = vadd.f32 %v217_v62, %v187_v61  ;;  %v221_v20 = vadd.f32 %v218_v0, %v188_v63 }
  0x2b   : > { %420 = vpow2.f32 %v236_v46  ;;  %v222_v12 = vadd.f32 %v219_v2, %v189_v6 }
  0x30   : > { %v411_v60 = vpop.eup %410 }
  0x31   : > { %v413_v1 = vpop.eup %412  ;;  %v229_v4 = vmul.f32 %v411_v60, %v169_v17 }
  0x32   : > { %v415_v8 = vpop.eup %414  ;;  %v230_v5 = vmul.f32 %v413_v1, %v170_v30 }
  0x33   : > { %v417_v13 = vpop.eup %416  ;;  %v245_v14 = vmul.f32 0.5, %v229_v4  ;;  %v231_v16 = vmul.f32 %v415_v8, %v171_v33 }
  0x34   : > { %v246_v18 = vmul.f32 0.5, %v230_v5  ;;  %v238_v9 = vmul.f32 %v417_v13, %v175_v37  ;;  %v419_v21 = vpop.eup %418 }
  0x35   : > { %v248_v17 = vsub.f32 %v214_v3, %v245_v14  ;;  %v247_v22 = vmul.f32 0.5, %v231_v16  ;;  %v280_v23 = vadd.f32 %v245_v14, %v214_v3  ;;  %v239_v26 = vmul.f32 %v419_v21, %v176_v38  ;;  %v421_v28 = vpop.eup %420 }
  0x36   : > { %v249_v24 = vsub.f32 %v215_v11, %v246_v18  ;;  %v262_v25 = vmul.f32 0.5, %v238_v9  ;;  %v281_v27 = vadd.f32 %v246_v18, %v215_v11  ;;  %v240_v36 = vmul.f32 %v421_v28, %v556_v40 }
  0x37   : > { %v252_v29 = vmax.f32 %v248_v17, 0.0  ;;  %v250_v30 = vsub.f32 %v216_v15, %v247_v22  ;;  %v283_v31 = vmax.f32 %v280_v23, 0.0  ;;  %v282_v32 = vadd.f32 %v247_v22, %v216_v15 }
  0x38   : > { %v253_v33 = vmax.f32 %v249_v24, 0.0  ;;  %v265_v34 = vsub.f32 %v220_v19, %v262_v25  ;;  %v263_v35 = vmul.f32 0.5, %v239_v26  ;;  %v284_v41 = vmax.f32 %v281_v27, 0.0 }
  0x39   : > { %v256_v37 = vmin.f32 %v255_v10, %v252_v29  ;;  %v254_v38 = vmax.f32 %v250_v30, 0.0  ;;  %v286_v39 = vmin.f32 %v255_v10, %v283_v31  ;;  %v264_v45 = vmul.f32 0.5, %v240_v36 }
  0x3a   : > { %v257_v42 = vmin.f32 %v255_v10, %v253_v33  ;;  %v269_v43 = vmax.f32 %v265_v34, 0.0  ;;  %v266_v44 = vsub.f32 %v221_v20, %v263_v35  ;;  %v287_v47 = vmin.f32 %v255_v10, %v284_v41 }
  0x3b   : > { %259 = vst [vmem:[%s578_s30] sm:$0xff] %v256_v37  ;;  %v258_v46 = vmin.f32 %v255_v10, %v254_v38  ;;  %392 = vst [vmem:[%s578_s30 + $0x30] sm:$0xff] %v286_v39  ;;  %v285_v48 = vmax.f32 %v282_v32, 0.0  ;;  %v293_v49 = vadd.f32 %v262_v25, %v220_v19  ;;  %v267_v51 = vsub.f32 %v222_v12, %v264_v45 }
  0x3c   : > { %260 = vst [vmem:[%s578_s30 + $0x8] sm:$0xff] %v257_v42  ;;  %v273_v40 = vmin.f32 %v272_v7, %v269_v43  ;;  %v270_v50 = vmax.f32 %v266_v44, 0.0  ;;  %v294_v52 = vadd.f32 %v263_v35, %v221_v20  ;;  %393 = vst [vmem:[%s578_s30 + $0x38] sm:$0xff] %v287_v47  ;;  %v295_v55 = vadd.f32 %v264_v45, %v222_v12 }
  0x3d   : > { %261 = vst [vmem:[%s578_s30 + $0x10] sm:$0x3] %v258_v46  ;;  %v288_v53 = vmin.f32 %v255_v10, %v285_v48  ;;  %v296_v54 = vmax.f32 %v293_v49, 0.0  ;;  %v271_v57 = vmax.f32 %v267_v51, 0.0 }
  0x3e   : > { %389 = vst [vmem:[%s578_s30 + $0x18] sm:$0xff] %v273_v40  ;;  %v274_v56 = vmin.f32 %v272_v7, %v270_v50  ;;  %v297_v58 = vmax.f32 %v294_v52, 0.0  ;;  %v298_v60 = vmax.f32 %v295_v55, 0.0 }
  0x3f   : > { %394 = vst [vmem:[%s578_s30 + $0x40] sm:$0x3] %v288_v53  ;;  %v299_v59 = vmin.f32 %v272_v7, %v296_v54  ;;  %v275_v61 = vmin.f32 %v272_v7, %v271_v57 }
  0x40   : > { %390 = vst [vmem:[%s578_s30 + $0x20] sm:$0xff] %v274_v56  ;;  %v300_v62 = vmin.f32 %v272_v7, %v297_v58  ;;  %v301_v63 = vmin.f32 %v272_v7, %v298_v60 }
  0x41   : > { %395 = vst [vmem:[%s578_s30 + $0x48] sm:$0xff] %v299_v59  ;;  %391 = vst [vmem:[%s578_s30 + $0x28] sm:$0x3] %v275_v61 }
  0x42   : > { %396 = vst [vmem:[%s578_s30 + $0x50] sm:$0xff] %v300_v62  ;;  %397 = vst [vmem:[%s578_s30 + $0x58] sm:$0x3] %v301_v63 }
  0x43 PF: > { %s19_s17 = sadd.s32 1, %s442_s17  }
  0x44   : > { %p16_p9 = scmp.ge.s32.totalorder %s19_s17, 4  }
  0x46   :  { %18 = sbr.rel (!%p16_p9) target bundleno = 16 (0x10), region = 67 }

</bundles_post_ra>
